<compile_context>
chip_gen: v5e
topology: v5e:2x2
jax: 0.10.0
libtpu: 0.0.40
codegen_flags: <defaults>
</compile_context>

<pallas_src>
import numpy as np
import jax
import jax.numpy as jnp
from jax.experimental import pallas as pl
from jax.experimental.pallas import tpu as pltpu


_TINY = float(np.finfo(np.float32).tiny)


# ----------------------------------------------------------------------------
# Fused Pallas kernel: transform + inverse for one batch element
# ----------------------------------------------------------------------------

def stft_fwd_inv_kernel(xc_ref, fwd_ref, inv_ref, ws_ref, mag_ref, rec_ref):
    # xc_ref : (1, n_chunks, hop)      reflect-padded signal, chunked by hop
    # fwd_ref: (filter, 2*cutoff)      windowed forward Fourier basis (transposed)
    # inv_ref: (2*cutoff, filter)      windowed inverse (pinv) basis
    # ws_ref : (n_chunks, hop)         (filter/hop) / window_sumsquare  (precomputed)
    # mag_ref: (1, n_frames, cutoff)   STFT magnitude (frames-major; wrapper transposes)
    # rec_ref: (1, n_chunks, hop)      full-length reconstruction (wrapper crops padding)
    _, n_frames, cutoff = mag_ref.shape
    _, n_chunks, hop = rec_ref.shape
    r = n_chunks - n_frames + 1            # == filter_length // hop_length

    xc = xc_ref[0]                         # (n_chunks, hop), loaded once
    fwd = fwd_ref[...]                     # (filter, 2*cutoff)

    # ---- transform: strided conv1d == sum of r shifted (n_frames,hop)x(hop,2c) matmuls
    spec = jnp.zeros((n_frames, 2 * cutoff), jnp.float32)
    for s in range(r):                     # r is tiny (2 at module defaults) -> unrolled
        spec = spec + jnp.dot(xc[s:s + n_frames, :],
                              fwd[s * hop:(s + 1) * hop, :],
                              preferred_element_type=jnp.float32)
    real = spec[:, :cutoff]
    imag = spec[:, cutoff:]
    mag_ref[0] = jnp.sqrt(real * real + imag * imag).astype(mag_ref.dtype)

    # ---- inverse: mag*cos(phase) == real, mag*sin(phase) == imag identically, so the
    # recombined spectrum is `spec`.  conv_transpose1d == one matmul + overlap-add.
    y = jnp.dot(spec, inv_ref[...], preferred_element_type=jnp.float32)  # (n_frames, filter)

    # overlap-add in VMEM, then one normalization pass (window_sumsquare + scale folded
    # into ws_ref) and a single whole-block store.
    rec_ref[0] = jnp.zeros((n_chunks, hop), jnp.float32)
    for s in range(r):
        rec_ref[0, s:s + n_frames, :] += y[:, s * hop:(s + 1) * hop]
    rec_ref[0] = rec_ref[0] * ws_ref[...]


# ----------------------------------------------------------------------------
# Host-side constant buffers (same math as the PyTorch __init__ / window_sumsquare)
# ----------------------------------------------------------------------------

def _hann_periodic(n):
    # == scipy.signal.get_window('hann', n, fftbins=True)
    return 0.5 - 0.5 * np.cos(2.0 * np.pi * np.arange(n) / n)


def make_stft_buffers(filter_length, hop_length, win_length=None, window="hann"):
    del window  # only 'hann' is implemented (module default)
    if win_length is None:
        win_length = filter_length
    assert filter_length >= win_length
    cutoff = filter_length // 2 + 1
    scale = filter_length / hop_length
    fb = np.fft.fft(np.eye(filter_length))
    fb = np.vstack([np.real(fb[:cutoff, :]), np.imag(fb[:cutoff, :])])     # (2c, filter)
    inv = np.linalg.pinv(scale * fb).T                                      # (2c, filter)
    # pad_center(hann(win_length), filter_length)
    win = _hann_periodic(win_length)
    lpad = (filter_length - win_length) // 2
    winp = np.pad(win, (lpad, filter_length - win_length - lpad))
    return {
        "forward_basis": (fb * winp[None, :]).astype(np.float32),          # (2c, filter)
        "inverse_basis": (inv * winp[None, :]).astype(np.float32),         # (2c, filter)
        "window_padded": winp.astype(np.float32),                          # (filter,)
    }


def window_sumsquare_np(win_padded, n_frames, hop_length, n_fft):
    # window_sumsquare(...) from the module (norm=None); window already padded to n_fft.
    n = n_fft + hop_length * (n_frames - 1)
    x = np.zeros(n, dtype=np.float32)
    win_sq = win_padded.astype(np.float32) ** 2
    for i in range(n_frames):
        sample = i * hop_length
        x[sample:min(n, sample + n_fft)] += win_sq[:max(0, min(n_fft, n - sample))]
    return x


# ----------------------------------------------------------------------------
# Forward wrapper (one fused pallas_call)
# ----------------------------------------------------------------------------

def stft_forward(x, bufs, *, filter_length, hop_length):
    """STFT.forward: returns (reconstruction (B, num_samples),
    magnitude (B, cutoff, n_frames) like PyTorch's transform())."""
    B, num_samples = x.shape
    pad = filter_length // 2
    cutoff = filter_length // 2 + 1

    assert filter_length % hop_length == 0, "kernel assumes hop_length | filter_length"

    # reflect pad (== F.pad(..., mode='reflect') on the sample axis), chunk by hop
    xp = jnp.pad(x, ((0, 0), (pad, pad)), mode="reflect")
    L = num_samples + 2 * pad
    assert L % hop_length == 0, "num_samples + filter_length must be a hop multiple"
    n_chunks = L // hop_length
    n_frames = (L - filter_length) // hop_length + 1        # == n_chunks - r + 1
    xc = xp.reshape(B, n_chunks, hop_length)                # contiguous reshape (free)

    # Fold `/ window_sumsquare` (where > tiny) and `* filter/hop` into one multiplier.
    ws = window_sumsquare_np(bufs["window_padded"], n_frames, hop_length, filter_length)
    scale = float(filter_length) / float(hop_length)
    inv_ws = np.where(ws > _TINY, scale / ws, scale).astype(np.float32)
    inv_ws = jnp.asarray(inv_ws.reshape(n_chunks, hop_length))

    fwd_t = jnp.asarray(bufs["forward_basis"].T)            # (filter, 2*cutoff)
    invb = jnp.asarray(bufs["inverse_basis"])               # (2*cutoff, filter)

    mag, rec = pl.pallas_call(
        stft_fwd_inv_kernel,
        out_shape=(jax.ShapeDtypeStruct((B, n_frames, cutoff), jnp.float32),
                   jax.ShapeDtypeStruct((B, n_chunks, hop_length), jnp.float32)),
        grid=(B,),
        in_specs=[
            pl.BlockSpec((1, n_chunks, hop_length), lambda b: (b, 0, 0)),
            pl.BlockSpec((filter_length, 2 * cutoff), lambda b: (0, 0)),
            pl.BlockSpec((2 * cutoff, filter_length), lambda b: (0, 0)),
            pl.BlockSpec((n_chunks, hop_length), lambda b: (0, 0)),
        ],
        out_specs=(
            pl.BlockSpec((1, n_frames, cutoff), lambda b: (b, 0, 0)),
            pl.BlockSpec((1, n_chunks, hop_length), lambda b: (b, 0, 0)),
        ),
        compiler_params=pltpu.CompilerParams(dimension_semantics=("parallel",)),
    )(xc, fwd_t, invb, inv_ws)

    reconstruction = rec.reshape(B, L)[:, pad:pad + num_samples]
    magnitude = jnp.transpose(mag, (0, 2, 1))               # (B, cutoff, n_frames)
    return reconstruction, magnitude


# ----------------------------------------------------------------------------
# Pure-JAX reference (independent formulation, for correctness check)
# ----------------------------------------------------------------------------

def ref_stft_forward(x, bufs, *, filter_length, hop_length):
    B, num_samples = x.shape
    pad = filter_length // 2
    cutoff = filter_length // 2 + 1
    fwd = jnp.asarray(bufs["forward_basis"])                # (2c, filter)
    inv = jnp.asarray(bufs["inverse_basis"])                # (2c, filter)

    xp = jnp.pad(x, ((0, 0), (pad, pad)), mode="reflect")
    L = xp.shape[1]
    n_frames = (L - filter_length) // hop_length + 1
    idx = jnp.arange(n_frames)[:, None] * hop_length + jnp.arange(filter_length)[None, :]
    frames = xp[:, idx]                                                     # (B, nf, filter)
    spec = jnp.einsum("btf,cf->btc", frames, fwd,
                      precision=jax.lax.Precision.HIGHEST)                  # (B, nf, 2c)
    real, imag = spec[..., :cutoff], spec[..., cutoff:]
    magnitude = jnp.transpose(jnp.sqrt(real ** 2 + imag ** 2), (0, 2, 1))   # (B, c, nf)

    # inverse: (mag*cos(phase), mag*sin(phase)) == (real, imag)
    y = jnp.einsum("btc,cf->btf", spec, inv,
                   precision=jax.lax.Precision.HIGHEST)                     # (B, nf, filter)
    out_len = (n_frames - 1) * hop_length + filter_length
    out = jnp.zeros((B, out_len), jnp.float32)
    for t in range(n_frames):
        out = out.at[:, t * hop_length:t * hop_length + filter_length].add(y[:, t])
    ws = jnp.asarray(window_sumsquare_np(bufs["window_padded"], n_frames,
                                         hop_length, filter_length))
    nz = ws > _TINY
    out = jnp.where(nz[None, :], out / jnp.where(nz, ws, 1.0)[None, :], out)
    out = out * (float(filter_length) / float(hop_length))
    reconstruction = out[:, pad:pad + num_samples]
    return reconstruction, magnitude


# ----------------------------------------------------------------------------
# Main
# ----------------------------------------------------------------------------

if __name__ == "__main__":
    key = jax.random.PRNGKey(0)

    # Small-shape STFT consistent with the module (defaults are 1024/512; same 2:1 ratio).
    B = 2
    filter_length, hop_length = 128, 64
    num_samples = 1024

    x = jax.random.normal(key, (B, num_samples), jnp.float32)
    bufs = make_stft_buffers(filter_length, hop_length)

    rec, mag = stft_forward(x, bufs, filter_length=filter_length, hop_length=hop_length)
    rec = jax.block_until_ready(rec)
    mag = jax.block_until_ready(mag)

    ref_rec, ref_mag = ref_stft_forward(x, bufs, filter_length=filter_length,
                                        hop_length=hop_length)
    np.testing.assert_allclose(np.asarray(mag), np.asarray(ref_mag), rtol=2e-3, atol=2e-3)
    np.testing.assert_allclose(np.asarray(rec), np.asarray(ref_rec), rtol=2e-3, atol=2e-3)

    print("KERNEL_OK")
</pallas_src>

<mosaic_0001>
module attributes {stable_mosaic.version = 11 : i64} {
  func.func @stft_fwd_inv_kernel(%arg0: i32, %arg1: memref<1x18x64xf32, #tpu.memory_space<vmem>>, %arg2: memref<128x130xf32, #tpu.memory_space<vmem>>, %arg3: memref<130x128xf32, #tpu.memory_space<vmem>>, %arg4: memref<18x64xf32, #tpu.memory_space<vmem>>, %arg5: memref<1x17x65xf32, #tpu.memory_space<vmem>>, %arg6: memref<1x18x64xf32, #tpu.memory_space<vmem>>) attributes {dimension_semantics = [#tpu.dimension_semantics<parallel>], iteration_bounds = array<i64: 2>, scalar_prefetch = 0 : i64, scratch_operands = 0 : i64, tpu.core_type = #tpu.core_type<tc>, window_params = [{transform_indices = @transform_0, window_bounds = array<i64: 1, 18, 64>}, {pipeline_mode = #tpu.pipeline_mode<synchronous>, transform_indices = @transform_1, window_bounds = array<i64: 128, 130>}, {pipeline_mode = #tpu.pipeline_mode<synchronous>, transform_indices = @transform_2, window_bounds = array<i64: 130, 128>}, {pipeline_mode = #tpu.pipeline_mode<synchronous>, transform_indices = @transform_3, window_bounds = array<i64: 18, 64>}, {transform_indices = @transform_4, window_bounds = array<i64: 1, 17, 65>}, {transform_indices = @transform_5, window_bounds = array<i64: 1, 18, 64>}]} {
    %c0 = arith.constant 0 : index
    %c0_0 = arith.constant 0 : index
    %c0_1 = arith.constant 0 : index
    %0 = vector.load %arg1[%c0, %c0_0, %c0_1] : memref<1x18x64xf32, #tpu.memory_space<vmem>>, vector<1x18x64xf32>
    %1 = vector.shape_cast %0 : vector<1x18x64xf32> to vector<18x64xf32>
    %c0_2 = arith.constant 0 : index
    %c0_3 = arith.constant 0 : index
    %2 = vector.load %arg2[%c0_2, %c0_3] : memref<128x130xf32, #tpu.memory_space<vmem>>, vector<128x130xf32>
    %cst = arith.constant 0.000000e+00 : f32
    %3 = vector.broadcast %cst : f32 to vector<17x130xf32>
    %4 = vector.extract_strided_slice %1 {offsets = [0, 0], sizes = [17, 64], strides = [1, 1]} : vector<18x64xf32> to vector<17x64xf32>
    %5 = vector.extract_strided_slice %2 {offsets = [0, 0], sizes = [64, 130], strides = [1, 1]} : vector<128x130xf32> to vector<64x130xf32>
    %cst_4 = arith.constant dense<0.000000e+00> : vector<17x130xf32>
    %6 = tpu.matmul %4, %5, %cst_4 {dimension_numbers = #tpu.dot_dimension_numbers<[1], [0], [0], [1], [0, 0, 1, 1], [], []>} : vector<17x64xf32>, vector<64x130xf32>, vector<17x130xf32> -> vector<17x130xf32>
    %7 = arith.addf %3, %6 : vector<17x130xf32>
    %8 = vector.extract_strided_slice %1 {offsets = [1, 0], sizes = [17, 64], strides = [1, 1]} : vector<18x64xf32> to vector<17x64xf32>
    %9 = vector.extract_strided_slice %2 {offsets = [64, 0], sizes = [64, 130], strides = [1, 1]} : vector<128x130xf32> to vector<64x130xf32>
    %cst_5 = arith.constant dense<0.000000e+00> : vector<17x130xf32>
    %10 = tpu.matmul %8, %9, %cst_5 {dimension_numbers = #tpu.dot_dimension_numbers<[1], [0], [0], [1], [0, 0, 1, 1], [], []>} : vector<17x64xf32>, vector<64x130xf32>, vector<17x130xf32> -> vector<17x130xf32>
    %11 = arith.addf %7, %10 : vector<17x130xf32>
    %12 = vector.extract_strided_slice %11 {offsets = [0, 0], sizes = [17, 65], strides = [1, 1]} : vector<17x130xf32> to vector<17x65xf32>
    %13 = vector.extract_strided_slice %11 {offsets = [0, 65], sizes = [17, 65], strides = [1, 1]} : vector<17x130xf32> to vector<17x65xf32>
    %14 = arith.mulf %12, %12 : vector<17x65xf32>
    %15 = arith.mulf %13, %13 : vector<17x65xf32>
    %16 = arith.addf %14, %15 : vector<17x65xf32>
    %17 = math.sqrt %16 : vector<17x65xf32>
    %c0_6 = arith.constant 0 : index
    %c0_7 = arith.constant 0 : index
    %c0_8 = arith.constant 0 : index
    %18 = vector.load %arg5[%c0_6, %c0_7, %c0_8] : memref<1x17x65xf32, #tpu.memory_space<vmem>>, vector<1x17x65xf32>
    %19 = vector.shape_cast %18 : vector<1x17x65xf32> to vector<17x65xf32>
    %20 = vector.shape_cast %17 : vector<17x65xf32> to vector<1x17x65xf32>
    tpu.vector_store %arg5[%c0_6, %c0_7, %c0_8], %20 {strides = array<i32>} : memref<1x17x65xf32, #tpu.memory_space<vmem>>, vector<1x17x65xf32>,
    %c0_9 = arith.constant 0 : index
    %c0_10 = arith.constant 0 : index
    %21 = vector.load %arg3[%c0_9, %c0_10] : memref<130x128xf32, #tpu.memory_space<vmem>>, vector<130x128xf32>
    %cst_11 = arith.constant dense<0.000000e+00> : vector<17x128xf32>
    %22 = tpu.matmul %11, %21, %cst_11 {dimension_numbers = #tpu.dot_dimension_numbers<[1], [0], [0], [1], [0, 0, 1, 1], [], []>} : vector<17x130xf32>, vector<130x128xf32>, vector<17x128xf32> -> vector<17x128xf32>
    %cst_12 = arith.constant 0.000000e+00 : f32
    %23 = vector.broadcast %cst_12 : f32 to vector<18x64xf32>
    %c0_13 = arith.constant 0 : index
    %c0_14 = arith.constant 0 : index
    %c0_15 = arith.constant 0 : index
    %24 = vector.load %arg6[%c0_13, %c0_14, %c0_15] : memref<1x18x64xf32, #tpu.memory_space<vmem>>, vector<1x18x64xf32>
    %25 = vector.shape_cast %24 : vector<1x18x64xf32> to vector<18x64xf32>
    %26 = vector.shape_cast %23 : vector<18x64xf32> to vector<1x18x64xf32>
    tpu.vector_store %arg6[%c0_13, %c0_14, %c0_15], %26 {strides = array<i32>} : memref<1x18x64xf32, #tpu.memory_space<vmem>>, vector<1x18x64xf32>,
    %c0_16 = arith.constant 0 : index
    %c0_17 = arith.constant 0 : index
    %c0_18 = arith.constant 0 : index
    %27 = vector.load %arg6[%c0_16, %c0_17, %c0_18] : memref<1x18x64xf32, #tpu.memory_space<vmem>>, vector<1x17x64xf32>
    %28 = vector.shape_cast %27 : vector<1x17x64xf32> to vector<17x64xf32>
    %29 = vector.extract_strided_slice %22 {offsets = [0, 0], sizes = [17, 64], strides = [1, 1]} : vector<17x128xf32> to vector<17x64xf32>
    %30 = arith.addf %28, %29 : vector<17x64xf32>
    %c0_19 = arith.constant 0 : index
    %c0_20 = arith.constant 0 : index
    %c0_21 = arith.constant 0 : index
    %31 = vector.load %arg6[%c0_19, %c0_20, %c0_21] : memref<1x18x64xf32, #tpu.memory_space<vmem>>, vector<1x17x64xf32>
    %32 = vector.shape_cast %31 : vector<1x17x64xf32> to vector<17x64xf32>
    %33 = vector.shape_cast %30 : vector<17x64xf32> to vector<1x17x64xf32>
    tpu.vector_store %arg6[%c0_19, %c0_20, %c0_21], %33 {strides = array<i32>} : memref<1x18x64xf32, #tpu.memory_space<vmem>>, vector<1x17x64xf32>,
    %c0_22 = arith.constant 0 : index
    %c1 = arith.constant 1 : index
    %c0_23 = arith.constant 0 : index
    %34 = vector.load %arg6[%c0_22, %c1, %c0_23] : memref<1x18x64xf32, #tpu.memory_space<vmem>>, vector<1x17x64xf32>
    %35 = vector.shape_cast %34 : vector<1x17x64xf32> to vector<17x64xf32>
    %36 = vector.extract_strided_slice %22 {offsets = [0, 64], sizes = [17, 64], strides = [1, 1]} : vector<17x128xf32> to vector<17x64xf32>
    %37 = arith.addf %35, %36 : vector<17x64xf32>
    %c0_24 = arith.constant 0 : index
    %c1_25 = arith.constant 1 : index
    %c0_26 = arith.constant 0 : index
    %38 = vector.load %arg6[%c0_24, %c1_25, %c0_26] : memref<1x18x64xf32, #tpu.memory_space<vmem>>, vector<1x17x64xf32>
    %39 = vector.shape_cast %38 : vector<1x17x64xf32> to vector<17x64xf32>
    %40 = vector.shape_cast %37 : vector<17x64xf32> to vector<1x17x64xf32>
    tpu.vector_store %arg6[%c0_24, %c1_25, %c0_26], %40 {strides = array<i32>} : memref<1x18x64xf32, #tpu.memory_space<vmem>>, vector<1x17x64xf32>,
    %c0_27 = arith.constant 0 : index
    %c0_28 = arith.constant 0 : index
    %c0_29 = arith.constant 0 : index
    %41 = vector.load %arg6[%c0_27, %c0_28, %c0_29] : memref<1x18x64xf32, #tpu.memory_space<vmem>>, vector<1x18x64xf32>
    %42 = vector.shape_cast %41 : vector<1x18x64xf32> to vector<18x64xf32>
    %c0_30 = arith.constant 0 : index
    %c0_31 = arith.constant 0 : index
    %43 = vector.load %arg4[%c0_30, %c0_31] : memref<18x64xf32, #tpu.memory_space<vmem>>, vector<18x64xf32>
    %44 = arith.mulf %42, %43 : vector<18x64xf32>
    %c0_32 = arith.constant 0 : index
    %c0_33 = arith.constant 0 : index
    %c0_34 = arith.constant 0 : index
    %45 = vector.load %arg6[%c0_32, %c0_33, %c0_34] : memref<1x18x64xf32, #tpu.memory_space<vmem>>, vector<1x18x64xf32>
    %46 = vector.shape_cast %45 : vector<1x18x64xf32> to vector<18x64xf32>
    %47 = vector.shape_cast %44 : vector<18x64xf32> to vector<1x18x64xf32>
    tpu.vector_store %arg6[%c0_32, %c0_33, %c0_34], %47 {strides = array<i32>} : memref<1x18x64xf32, #tpu.memory_space<vmem>>, vector<1x18x64xf32>,
    return
  }
  func.func @transform_0(%arg0: i32) -> (i32, i32, i32) {
    %c0_i32 = arith.constant 0 : i32
    %c0_i32_0 = arith.constant 0 : i32
    %c0_i32_1 = arith.constant 0 : i32
    return %arg0, %c0_i32, %c0_i32_0 : i32, i32, i32
  }
  func.func @transform_1(%arg0: i32) -> (i32, i32) {
    %c0_i32 = arith.constant 0 : i32
    %c0_i32_0 = arith.constant 0 : i32
    %c0_i32_1 = arith.constant 0 : i32
    return %c0_i32, %c0_i32_0 : i32, i32
  }
  func.func @transform_2(%arg0: i32) -> (i32, i32) {
    %c0_i32 = arith.constant 0 : i32
    %c0_i32_0 = arith.constant 0 : i32
    %c0_i32_1 = arith.constant 0 : i32
    return %c0_i32, %c0_i32_0 : i32, i32
  }
  func.func @transform_3(%arg0: i32) -> (i32, i32) {
    %c0_i32 = arith.constant 0 : i32
    %c0_i32_0 = arith.constant 0 : i32
    %c0_i32_1 = arith.constant 0 : i32
    return %c0_i32, %c0_i32_0 : i32, i32
  }
  func.func @transform_4(%arg0: i32) -> (i32, i32, i32) {
    %c0_i32 = arith.constant 0 : i32
    %c0_i32_0 = arith.constant 0 : i32
    %c0_i32_1 = arith.constant 0 : i32
    return %arg0, %c0_i32, %c0_i32_0 : i32, i32, i32
  }
  func.func @transform_5(%arg0: i32) -> (i32, i32, i32) {
    %c0_i32 = arith.constant 0 : i32
    %c0_i32_0 = arith.constant 0 : i32
    %c0_i32_1 = arith.constant 0 : i32
    return %arg0, %c0_i32, %c0_i32_0 : i32, i32, i32
  }
}

</mosaic_0001>

<bundles_post_ra>
// kernel: tpu_custom_call.1
= control target key start
LH: loop header
LB: loop body
LE: loop exit
PB: predicated region body
PF: predicated region fallthrough
CT: control target
= control target key end

     0   :  { %s785_s18 = smov 0   ;;  %s1044_s0 = inlined_call_operand.vmem [shape: f32[2,18,64], index: 0, kind: input, shape index: {}]   ;;  %s1045_s1 = inlined_call_operand.vmem [shape: f32[128,130], index: 1, kind: input, shape index: {}]   ;;  %s1046_s2 = inlined_call_operand.vmem [shape: f32[130,128], index: 2, kind: input, shape index: {}]   ;;  %s1047_s3 = inlined_call_operand.vmem [shape: f32[18,64], index: 3, kind: input, shape index: {}]   ;;  %s1048_s4 = inlined_call_operand.vmem [shape: f32[2,17,65], index: 4, kind: output, shape index: {0}]   ;;  %s1049_s5 = inlined_call_operand.vmem [shape: f32[2,18,64], index: 5, kind: output, shape index: {1}]  }
   0x1 LB: > { %s692_s19 = sadd.s32 4294967295, %s750_s18   ;;  %p696_p0 = scmp.ge.s32.totalorder %s750_s18, 1  ;;  %s750_s18 = sphi %s785_s18, %s16_s18  }
   0x2   : > { %p190_p1 = scmp.lt.s32.totalorder %s750_s18, 3 }
   0x4   : > { %p191_p2 = pnand %p696_p0, %p190_p1 }
   0x5   : > { %p223_p3 = scmp.lt.s32.totalorder (!%p191_p2), %s692_s19, 1  ;;  %s752_s29 = smov (!%p191_p2), 63  }
   0x6   : > { %194 = sbr.rel (%p191_p2) target bundleno = 450 (0x1c2), region = 36  ;;  %s754_s8 = smov (!%p191_p2), 64  }
   0xb   : > { %v271_v0 = vld [vmem:[%s1045_s1 + $0xf0] sm:$0xff]  ;;  %v272_v1 = vld [vmem:[%s1045_s1 + $0xf8] sm:$0xff]  ;;  %v269_v2 = vld [vmem:[%s1045_s1 + $0xe0] sm:$0xff]  ;;  %s1051_s19 = smov (!%p223_p3, %s692_s19), 1  ;;  %vm276_vm0 = vcmask 1046528   ;;  %vm282_vm1 = vcmask 523264  }
   0xc   : > { %297 = vmatpush.msra.mxu2 %v271_v0  ;;  %718 = vmatpush.msra.mxu3 %v272_v1  ;;  %v270_v3 = vld [vmem:[%s1045_s1 + $0xe8] sm:$0xff]  ;;  %v267_v4 = vld [vmem:[%s1045_s1 + $0xd0] sm:$0xff]  ;;  %v268_v5 = vld [vmem:[%s1045_s1 + $0xd8] sm:$0xff]  ;;  %s817_s11 = smul.u32 24, %s1051_s19  ;;  %vm501_vm2 = vcmask 1041408   ;;  %vm491_vm3 = vcmask 15360  }
   0xd   : > { %323 = vmatpush.msra.mxu1 %v272_v1  ;;  %v265_v6 = vld [vmem:[%s1045_s1 + $0xc0] sm:$0xff]  ;;  %v266_v7 = vld [vmem:[%s1045_s1 + $0xc8] sm:$0xff]  ;;  %v263_v8 = vld [vmem:[%s1045_s1 + $0xb0] sm:$0xff]  ;;  %vm559_vm4 = vcmask 517120   ;;  %vm423_vm5 = vcmask 515072   ;;  %vm472_vm6 = vcmask 524288  }
   0xe   : > { %298 = vmatpush.msra.mxu2 %v269_v2  ;;  %719 = vmatpush.msra.mxu3 %v270_v3  ;;  %v264_v9 = vld [vmem:[%s1045_s1 + $0xb8] sm:$0xff]  ;;  %s227_s20 = scalar_lea.vmem %s1044_s0, %s817_s11  ;;  %v261_v13 = vld [vmem:[%s1045_s1 + $0xa0] sm:$0xff]  ;;  %v262_v14 = vld [vmem:[%s1045_s1 + $0xa8] sm:$0xff]  ;;  %s980_s7 = scalar_lea.vmem %s1049_s5, %s817_s11  ;;  %vm569_vm9 = vcmask 516096   ;;  %vm469_vm10 = vcmask 531456  }
   0xf   : > { %324 = vmatpush.msra.mxu1 %v270_v3  ;;  %v829_v10 = vld [vmem:[%s227_s20] sm:$0xff]  ;;  %v831_v11 = vld [vmem:[%s227_s20 + $0x8] sm:$0xff]  ;;  %v833_v12 = vld [vmem:[%s227_s20 + $0x10] sm:$0x3]  ;;  %s1001_s12 = scalar_lea.vmem %s1048_s4, %s817_s11 }
  0x10   : > { %299 = vmatpush.msra.mxu2 %v267_v4  ;;  %720 = vmatpush.msra.mxu3 %v268_v5  ;;  %v277_v15 = vrot.slane %v829_v10, 1  ;;  %v278_v16 = vrot.slane %v831_v11, 1  ;;  %v280_v17 = vrot.slane %v833_v12, 1  ;;  %v259_v18 = vld [vmem:[%s1045_s1 + $0x90] sm:$0xff]  ;;  %v260_v19 = vld [vmem:[%s1045_s1 + $0x98] sm:$0xff]  ;;  %v257_v20 = vld [vmem:[%s1045_s1 + $0x80] sm:$0xff] }
  0x11   : > { %325 = vmatpush.msra.mxu1 %v268_v5  ;;  %v258_v21 = vld [vmem:[%s1045_s1 + $0x88] sm:$0xff]  ;;  %v255_v24 = vld [vmem:[%s1045_s1 + $0x70] sm:$0xff]  ;;  %v256_v25 = vld [vmem:[%s1045_s1 + $0x78] sm:$0xff] }
  0x12   : > { %300 = vmatpush.msra.mxu2 %v265_v6  ;;  %721 = vmatpush.msra.mxu3 %v266_v7  ;;  %v279_v22 = vsel %vm276_vm0, %v277_v15, %v278_v16  ;;  %v281_v23 = vsel %vm276_vm0, %v278_v16, %v280_v17  ;;  %v253_v26 = vld [vmem:[%s1045_s1 + $0x60] sm:$0xff]  ;;  %v254_v27 = vld [vmem:[%s1045_s1 + $0x68] sm:$0xff]  ;;  %v252_v28 = vld [vmem:[%s1045_s1 + $0x58] sm:$0xff] }
  0x13   : > { %326 = vmatpush.msra.mxu1 %v266_v7  ;;  %v251_v29 = vld [vmem:[%s1045_s1 + $0x50] sm:$0xff]  ;;  %v250_v30 = vld [vmem:[%s1045_s1 + $0x48] sm:$0xff]  ;;  %v249_v31 = vld [vmem:[%s1045_s1 + $0x40] sm:$0xff] }
  0x14   : > { %301 = vmatpush.msra.mxu2 %v263_v8  ;;  %722 = vmatpush.msra.mxu3 %v264_v9  ;;  %v248_v32 = vld [vmem:[%s1045_s1 + $0x38] sm:$0xff]  ;;  %v247_v33 = vld [vmem:[%s1045_s1 + $0x30] sm:$0xff]  ;;  %v246_v34 = vld [vmem:[%s1045_s1 + $0x28] sm:$0xff] }
  0x15   : > { %327 = vmatpush.msra.mxu1 %v264_v9  ;;  %v245_v35 = vld [vmem:[%s1045_s1 + $0x20] sm:$0xff]  ;;  %v489_v36 = vld [vmem:[%s1046_s2 + $0x78] sm:$0xff]  ;;  %v488_v37 = vld [vmem:[%s1046_s2 + $0x70] sm:$0xff] }
  0x16   : > { %302 = vmatpush.msra.mxu2 %v261_v13  ;;  %723 = vmatpush.msra.mxu3 %v262_v14  ;;  %v244_v38 = vld [vmem:[%s1045_s1 + $0x18] sm:$0xff]  ;;  %v243_v39 = vld [vmem:[%s1045_s1 + $0x10] sm:$0xff]  ;;  %v242_v40 = vld [vmem:[%s1045_s1 + $0x8] sm:$0xff] }
  0x17   : > { %328 = vmatpush.msra.mxu1 %v262_v14  ;;  %505 = vmatpush.msra.mxu0 %v489_v36  ;;  %v241_v41 = vld [vmem:[%s1045_s1] sm:$0xff]  ;;  %v487_v42 = vld [vmem:[%s1046_s2 + $0x68] sm:$0xff]  ;;  %v485_v44 = vld [vmem:[%s1046_s2 + $0x58] sm:$0xff] }
  0x18   : > { %303 = vmatpush.msra.mxu2 %v259_v18  ;;  %724 = vmatpush.msra.mxu3 %v260_v19  ;;  %v486_v43 = vld [vmem:[%s1046_s2 + $0x60] sm:$0xff]  ;;  %v484_v45 = vld [vmem:[%s1046_s2 + $0x50] sm:$0xff]  ;;  %v483_v46 = vld [vmem:[%s1046_s2 + $0x48] sm:$0xff] }
  0x19   : > { %329 = vmatpush.msra.mxu1 %v260_v19  ;;  %506 = vmatpush.msra.mxu0 %v488_v37  ;;  %v482_v47 = vld [vmem:[%s1046_s2 + $0x40] sm:$0xff]  ;;  %v481_v48 = vld [vmem:[%s1046_s2 + $0x38] sm:$0xff]  ;;  %v480_v49 = vld [vmem:[%s1046_s2 + $0x30] sm:$0xff] }
  0x1a   : > { %304 = vmatpush.msra.mxu2 %v257_v20  ;;  %725 = vmatpush.msra.mxu3 %v258_v21  ;;  %v479_v50 = vld [vmem:[%s1046_s2 + $0x28] sm:$0xff]  ;;  %v478_v51 = vld [vmem:[%s1046_s2 + $0x20] sm:$0xff]  ;;  %v477_v53 = vld [vmem:[%s1046_s2 + $0x18] sm:$0xff] }
  0x1b   : > { %700 = vmatmul.msk.f32.vlgmr.msra.gmra.mxu2 %vm282_vm1, %v279_v22  ;;  %704 = vmatmul.msk.f32.vlgmr.msra.gmra.mxu3 %vm282_vm1, %v281_v23  ;;  %v490_v52 = vld [vmem:[%s1046_s2 + $0x80] sm:$0x3]  ;;  %v476_v54 = vld [vmem:[%s1046_s2 + $0x10] sm:$0xff]  ;;  %v475_v55 = vld [vmem:[%s1046_s2 + $0x8] sm:$0xff] }
  0x1c   : > { %355 = vmatpush.msrb.mxu2 %v255_v24  ;;  %381 = vmatpush.msrb.mxu3 %v256_v25  ;;  %v474_v56 = vld [vmem:[%s1046_s2] sm:$0xff] }
  0x1d   : > { %330 = vmatpush.msra.mxu1 %v258_v21  ;;  %507 = vmatpush.msra.mxu0 %v487_v42 }
  0x1e   : > { %356 = vmatpush.msrb.mxu2 %v253_v26  ;;  %382 = vmatpush.msrb.mxu3 %v254_v27 }
  0x1f   : > { %703 = vmatmul.msk.f32.vlgmr.msra.gmra.mxu1 %vm282_vm1, %v279_v22  ;;  %508 = vmatpush.msra.mxu0 %v486_v43 }
  0x20   : > { %383 = vmatpush.msrb.mxu3 %v252_v28  ;;  %357 = vmatpush.msrb.mxu2 %v251_v29 }
  0x21   : > { %509 = vmatpush.msra.mxu0 %v485_v44  ;;  %712 = vmatpush.msk.msrb.mxu1 %vm501_vm2, %v490_v52 }
  0x22   : > { %384 = vmatpush.msrb.mxu3 %v250_v30  ;;  %358 = vmatpush.msrb.mxu2 %v249_v31 }
  0x23   : > { %701 = vmatmul.msk.f32.gmra.mxu2 %vm282_vm1, %v281_v23  ;;  %705 = vmatmul.msk.f32.gmra.mxu3 %vm282_vm1, %v280_v17 }
  0x24   : > { %385 = vmatpush.msrb.mxu3 %v248_v32  ;;  %359 = vmatpush.msrb.mxu2 %v247_v33 }
  0x25   : > { %510 = vmatpush.msra.mxu0 %v484_v45 }
  0x26   : > { %386 = vmatpush.msrb.mxu3 %v246_v34  ;;  %360 = vmatpush.msrb.mxu2 %v245_v35 }
  0x27   : > { %511 = vmatpush.msra.mxu0 %v483_v46 }
  0x28   : > { %387 = vmatpush.msrb.mxu3 %v244_v38  ;;  %361 = vmatpush.msrb.mxu2 %v243_v39 }
  0x29   : > { %512 = vmatpush.msra.mxu0 %v482_v47 }
  0x2a   : > { %388 = vmatpush.msrb.mxu3 %v242_v40  ;;  %362 = vmatpush.msrb.mxu2 %v241_v41 }
  0x2b   : > { %702 = vmatmul.msk.f32.gmra.mxu2 %vm282_vm1, %v280_v17  ;;  %709 = vmatmul.msk.f32.vlgmr.msrb.gmra.mxu3 %vm282_vm1, %v829_v10  ;;  %v753_v17 = vmov 0.0  }
  0x2c   : > { %513 = vmatpush.msra.mxu0 %v481_v48  ;;  %557 = vst.msk [vmem:[%s980_s7] sm:$0xff] %vm282_vm1, %v753_v17 }
  0x2d   : > { %558 = vst.msk [vmem:[%s980_s7 + $0x8] sm:$0xff] %vm282_vm1, %v753_v17 }
  0x2e   : > { %514 = vmatpush.msra.mxu0 %v480_v49  ;;  %560 = vst.msk [vmem:[%s980_s7 + $0x10] sm:$0x3] %vm559_vm4, %v753_v17  ;;  %v595_v17 = vld [vmem:[%s1047_s3] sm:$0xff] }
  0x30   : > { %515 = vmatpush.msra.mxu0 %v479_v50 }
  0x32   : > { %516 = vmatpush.msra.mxu0 %v478_v51 }
  0x33   : > { %706 = vmatmul.msk.f32.vlgmr.msrb.gmra.mxu2 %vm282_vm1, %v829_v10  ;;  %710 = vmatmul.msk.f32.gmra.mxu3 %vm282_vm1, %v831_v11  ;;  %v561_v31 = vld [vmem:[%s980_s7] sm:$0xff] }
  0x34   : > { %517 = vmatpush.msra.mxu0 %v477_v53  ;;  %v562_v44 = vld [vmem:[%s980_s7 + $0x8] sm:$0xff] }
  0x36   : > { %518 = vmatpush.msra.mxu0 %v476_v54 }
  0x38   : > { %519 = vmatpush.msra.mxu0 %v475_v55 }
  0x3a   : > { %520 = vmatpush.msra.mxu0 %v474_v56 }
  0x3b   : > { %707 = vmatmul.msk.f32.gmra.mxu2 %vm282_vm1, %v831_v11  ;;  %711 = vmatmul.msk.f32.gmra.mxu3 %vm282_vm1, %v833_v12 }
  0x43   : > { %708 = vmatmul.msk.f32.gmra.mxu2 %vm282_vm1, %v833_v12 }
  0x9c   : > { %v332_v61 = vpop.f32.mrf.mxu1 }
  0x9e   : > { %v306_v57 = vpop.f32.mrf.mxu2  ;;  %v335_v58 = vpop.f32.mrf.mxu3 }
  0xa6   : > { %v309_v59 = vpop.f32.mrf.mxu2  ;;  %v338_v60 = vpop.f32.mrf.mxu3 }
  0xae   : > { %v312_v62 = vpop.f32.mrf.mxu2  ;;  %v390_v63 = vpop.f32.mrf.mxu3 }
  0xaf   : > { %v391_v0 = vadd.f32 %v390_v63, %v332_v61 }
  0xb1   : > { %713 = vmatmul.msk.f32.vlgmr.msrb.gmra.mxu1 %vm491_vm3, %v391_v0  ;;  %v402_v10 = vmul.f32 %v391_v0, %v391_v0 }
  0xb6   : > { %v364_v1 = vpop.f32.mrf.mxu2  ;;  %v393_v2 = vpop.f32.mrf.mxu3 }
  0xb7   : > { %v365_v3 = vadd.f32 %v364_v1, %v306_v57  ;;  %v394_v4 = vadd.f32 %v393_v2, %v335_v58  ;;  %v563_v57 = vld [vmem:[%s980_s7 + $0x10] sm:$0x1] }
  0xb9   : > { %521 = vmatmul.f32.vlgmr.msra.gmra.mxu0 %v365_v3  ;;  %714 = vmatmul.msk.f32.gmra.mxu1 %vm491_vm3, %v394_v4  ;;  %v399_v5 = vmul.f32 %v365_v3, %v365_v3  ;;  %v403_v14 = vmul.f32 %v394_v4, %v394_v4 }
  0xbb   : > { %411 = vrot.lane.b32.xlu0 %v399_v5, %s752_s29 }
  0xbe   : > { %v367_v6 = vpop.f32.mrf.mxu2  ;;  %v396_v7 = vpop.f32.mrf.mxu3 }
  0xbf   : > { %v368_v8 = vadd.f32 %v367_v6, %v309_v59  ;;  %v397_v9 = vadd.f32 %v396_v7, %v338_v60 }
  0xc1   : > { %524 = vmatmul.f32.gmra.mxu0 %v368_v8  ;;  %715 = vmatmul.msk.f32.gmra.mxu1 %vm491_vm3, %v397_v9  ;;  %v400_v11 = vmul.f32 %v368_v8, %v368_v8  ;;  %v404_v16 = vmul.f32 %v397_v9, %v397_v9 }
  0xc3   : > { %415 = vrot.lane.b32.xlu1 %v400_v11, %s752_s29  ;;  %413 = vrot.lane.b32.xlu0 %v402_v10, %s752_s29 }
  0xc6   : > { %v370_v12 = vpop.f32.mrf.mxu2 }
  0xc7   : > { %v371_v13 = vadd.f32 %v370_v12, %v312_v62 }
  0xc9   : > { %527 = vmatmul.f32.gmra.mxu0 %v371_v13  ;;  %v401_v15 = vmul.f32 %v371_v13, %v371_v13 }
  0xcb   : > { %419 = vrot.lane.b32.xlu2 %v401_v15, %s752_s29  ;;  %417 = vrot.lane.b32.xlu1 %v403_v14, %s752_s29 }
  0xd3   : > { %421 = vrot.lane.b32.xlu2 %v404_v16, %s752_s29 }
 0x125   : > { %v420_v18 = vpop.permute.xlu2 %419 }
 0x12d   : > { %v422_v19 = vpop.permute.xlu2 %421  ;;  %v412_v20 = vpop.permute.xlu0 %411 }
 0x12e   : > { %v426_v21 = vsel %vm423_vm5, %v420_v18, %v422_v19  ;;  %v548_v23 = vpop.f32.mrf.mxu1 }
 0x12f   : > { %v432_v22 = vadd.f32 %v426_v21, %v401_v15 }
 0x131   : > { %738 = vrsqrt.f32 %v432_v22  ;;  %vm464_vm7 = vcmp.eq.f32.partialorder %v432_v22, inf  ;;  %v467_v50 = vand.u32 2147483648, %v432_v22  ;;  %vm466_vm8 = vcmp.eq.f32.partialorder %v432_v22, 0.0 }
 0x135   : > { %v416_v24 = vpop.permute.xlu1 %415  ;;  %v414_v25 = vpop.permute.xlu0 %413 }
 0x136   : > { %v424_v26 = vsel %vm423_vm5, %v412_v20, %v414_v25  ;;  %v522_v27 = vpop.f32.mrf.mxu0  ;;  %v551_v36 = vpop.f32.mrf.mxu1 }
 0x137   : > { %v739_v28 = vpop.eup %738  ;;  %v430_v29 = vadd.f32 %v424_v26, %v399_v5  ;;  %v549_v30 = vadd.f32 %v548_v23, %v522_v27  ;;  %v596_v23 = vld [vmem:[%s1047_s3 + $0x8] sm:$0xff] }
 0x138   : > { %v458_v32 = vmul.f32 %v739_v28, %v432_v22 }
 0x139   : > { %740 = vrsqrt.f32 %v430_v29  ;;  %577 = vrot.lane.b32.xlu0 %v549_v30, %s754_s8  ;;  %v564_v34 = vadd.f32 %v561_v31, %v549_v30  ;;  %vm440_vm11 = vcmp.eq.f32.partialorder %v430_v29, inf  ;;  %v443_v1 = vand.u32 2147483648, %v430_v29 }
 0x13a   : > { %v459_v33 = vmul.f32 %v739_v28, %v458_v32  ;;  %vm442_vm12 = vcmp.eq.f32.partialorder %v430_v29, 0.0 }
 0x13b   : > { %567 = vst.msk [vmem:[%s980_s7] sm:$0xff] %vm282_vm1, %v564_v34 }
 0x13c   : > { %v460_v35 = vmul.f32 0.5, %v459_v33 }
 0x13d   : > { %v418_v37 = vpop.permute.xlu1 %417 }
 0x13e   : > { %v461_v38 = vsub.f32 1.5, %v460_v35  ;;  %v425_v39 = vsel %vm423_vm5, %v416_v24, %v418_v37  ;;  %v525_v40 = vpop.f32.mrf.mxu0  ;;  %v554_v55 = vpop.f32.mrf.mxu1  ;;  %v597_v24 = vld [vmem:[%s1047_s3 + $0x10] sm:$0x3] }
 0x13f   : > { %v741_v41 = vpop.eup %740  ;;  %v431_v42 = vadd.f32 %v425_v39, %v400_v11  ;;  %v552_v43 = vadd.f32 %v551_v36, %v525_v40  ;;  %v573_v11 = vld [vmem:[%s980_s7 + $0x11] sm:$0x1] }
 0x140   : > { %v462_v45 = vmul.f32 %v739_v28, %v461_v38  ;;  %v434_v46 = vmul.f32 %v741_v41, %v430_v29 }
 0x141   : > { %742 = vrsqrt.f32 %v431_v42  ;;  %579 = vrot.lane.b32.xlu1 %v552_v43, %s754_s8  ;;  %v565_v49 = vadd.f32 %v562_v44, %v552_v43  ;;  %vm452_vm13 = vcmp.eq.f32.partialorder %v431_v42, inf  ;;  %v455_v8 = vand.u32 2147483648, %v431_v42 }
 0x142   : > { %v463_v47 = vmul.f32 %v462_v45, %v432_v22  ;;  %v435_v48 = vmul.f32 %v741_v41, %v434_v46  ;;  %vm454_vm14 = vcmp.eq.f32.partialorder %v431_v42, 0.0 }
 0x143   : > { %568 = vst.msk [vmem:[%s980_s7 + $0x8] sm:$0xff] %vm282_vm1, %v565_v49 }
 0x144   : > { %v465_v51 = vsel %vm464_vm7, %v432_v22, %v463_v47  ;;  %v436_v52 = vmul.f32 0.5, %v435_v48 }
 0x145   : > { %v468_v53 = vsel %vm466_vm8, %v467_v50, %v465_v51 }
 0x146   : > { %473 = vst.msk [vmem:[%s1001_s12 + $0x10] sm:$0x1] %vm472_vm6, %v468_v53  ;;  %v437_v54 = vsub.f32 1.5, %v436_v52  ;;  %v528_v56 = vpop.f32.mrf.mxu0 }
 0x147   : > { %v743_v58 = vpop.eup %742  ;;  %v555_v59 = vadd.f32 %v554_v55, %v528_v56 }
 0x148   : > { %v438_v60 = vmul.f32 %v741_v41, %v437_v54  ;;  %v446_v61 = vmul.f32 %v743_v58, %v431_v42 }
 0x149   : > { %v566_v62 = vadd.f32 %v563_v57, %v555_v59  ;;  %581 = vrot.lane.b32.xlu2 %v555_v59, %s754_s8 }
 0x14a   : > { %v439_v63 = vmul.f32 %v438_v60, %v430_v29  ;;  %v447_v0 = vmul.f32 %v743_v58, %v446_v61  ;;  %v571_v14 = vld [vmem:[%s980_s7 + $0x1] sm:$0xff] }
 0x14b   : > { %570 = vst.msk [vmem:[%s980_s7 + $0x10] sm:$0x1] %vm569_vm9, %v566_v62 }
 0x14c   : > { %v441_v2 = vsel %vm440_vm11, %v430_v29, %v439_v63  ;;  %v448_v3 = vmul.f32 0.5, %v447_v0 }
 0x14d   : > { %v444_v4 = vsel %vm442_vm12, %v443_v1, %v441_v2 }
 0x14e   : > { %470 = vst.msk [vmem:[%s1001_s12] sm:$0xff] %vm469_vm10, %v444_v4  ;;  %v449_v5 = vsub.f32 1.5, %v448_v3 }
 0x150   : > { %v450_v6 = vmul.f32 %v743_v58, %v449_v5 }
 0x152   : > { %v451_v7 = vmul.f32 %v450_v6, %v431_v42  ;;  %v572_v19 = vld [vmem:[%s980_s7 + $0x9] sm:$0xff] }
 0x154   : > { %v453_v9 = vsel %vm452_vm13, %v431_v42, %v451_v7 }
 0x155   : > { %v456_v10 = vsel %vm454_vm14, %v455_v8, %v453_v9 }
 0x156   : > { %471 = vst.msk [vmem:[%s1001_s12 + $0x8] sm:$0xff] %vm469_vm10, %v456_v10 }
 0x1a3   : > { %v582_v12 = vpop.permute.xlu2 %581 }
 0x1a4   : > { %v588_v13 = vadd.f32 %v582_v12, %v573_v11 }
 0x1a6   : > { %591 = vst.msk [vmem:[%s980_s7 + $0x11] sm:$0x1] %vm569_vm9, %v588_v13 }
 0x1ab   : > { %v578_v15 = vpop.permute.xlu0 %577 }
 0x1ac   : > { %v586_v16 = vadd.f32 %v578_v15, %v571_v14 }
 0x1ae   : > { %589 = vst.msk [vmem:[%s980_s7 + $0x1] sm:$0xff] %vm282_vm1, %v586_v16 }
 0x1b3   : > { %v580_v18 = vpop.permute.xlu1 %579 }
 0x1b4   : > { %v587_v20 = vadd.f32 %v580_v18, %v572_v19 }
 0x1b5   : > { %v592_v21 = vld [vmem:[%s980_s7] sm:$0xff] }
 0x1b6   : > { %v598_v22 = vmul.f32 %v595_v17, %v592_v21  ;;  %590 = vst.msk [vmem:[%s980_s7 + $0x9] sm:$0xff] %vm282_vm1, %v587_v20 }
 0x1b8   : > { %601 = vst.msk [vmem:[%s980_s7] sm:$0xff] %vm282_vm1, %v598_v22 }
 0x1bd   : > { %v593_v25 = vld [vmem:[%s980_s7 + $0x8] sm:$0xff]  ;;  %v594_v26 = vld [vmem:[%s980_s7 + $0x10] sm:$0x3] }
 0x1be   : > { %v599_v27 = vmul.f32 %v596_v23, %v593_v25  ;;  %v600_v28 = vmul.f32 %v597_v24, %v594_v26 }
 0x1c0   : > { %602 = vst.msk [vmem:[%s980_s7 + $0x8] sm:$0xff] %vm282_vm1, %v599_v27 }
 0x1c1   : > { %603 = vst.msk [vmem:[%s980_s7 + $0x10] sm:$0x3] %vm559_vm4, %v600_v28 }
 0x1c2 PF: > { %s16_s18 = sadd.s32 1, %s750_s18  }
 0x1c3   : > { %p13_p4 = scmp.ge.s32.totalorder %s16_s18, 4  }
 0x1c5   :  { %15 = sbr.rel (!%p13_p4) target bundleno = 1 (0x1), region = 78 }

</bundles_post_ra>
